<compile_context>
chip_gen: v7x
topology: tpu7x:2x2x1
jax: 0.10.0
libtpu: 0.0.40
codegen_flags: <defaults>
</compile_context>

<pallas_src>
import functools

import jax
import jax.numpy as jnp
from jax.experimental import pallas as pl
from jax.experimental.pallas import tpu as pltpu


def _nsf_kernel(params_ref, e_ref, z_ref, out_ref, *,
                rp: int, upp: int, sine_amp: float, noise_std: float):
    """One lane-dense time-tile (all padded B*D rows) per grid step.

    params_ref: (1, 3*Rp, TILE_L)  packed per-frame [fo ; rad ; uv] rows
    e_ref     : (TILE_L, TILE_T)   nearest-upsample expansion matrix (0/1)
    z_ref     : (Rp, TILE_T)       standard normal noise
    out_ref   : (Rp, TILE_T)       tanh(sine source)
    """
    params = params_ref[0]                                   # (3*Rp, TILE_L)
    e = e_ref[...]                                           # (TILE_L, TILE_T)

    # Single MXU pass expands all per-frame quantities onto per-sample lanes.
    expanded = jnp.dot(params, e, preferred_element_type=jnp.float32)
    fo_s = expanded[:rp]                                     # frame phase offset
    rad_s = expanded[rp:2 * rp]                              # per-sample radian step
    uv_s = expanded[2 * rp:3 * rp]                           # exact 0/1 voiced mask

    tile_t = out_ref.shape[-1]
    # In-frame sample ramp (i + 1), i = t % upp — replaces the old ER matrix.
    col = jax.lax.broadcasted_iota(jnp.int32, (1, tile_t), 1)
    ramp = (col % upp + 1).astype(jnp.float32)               # (1, TILE_T)

    phase = fo_s + rad_s * ramp
    two_pi = jnp.float32(2.0 * jnp.pi)
    phase = phase - two_pi * jnp.floor(phase * jnp.float32(1.0 / (2.0 * jnp.pi)))
    sine = jnp.sin(phase) * jnp.float32(sine_amp)

    noise_amp = (uv_s * jnp.float32(noise_std)
                 + (jnp.float32(1.0) - uv_s) * jnp.float32(sine_amp / 3.0))
    out_ref[...] = jnp.tanh(sine * uv_s + noise_amp * z_ref[...])


def _pick_tile_frames(L, upp, target_t=2048, e_cap_bytes=4 << 20):
    """Frames per time-tile: divides L, lane-dense (tile_l*upp % 128 == 0),
    expansion matrix under a VMEM cap, preferring >= 2 tiles (v7x megacore)."""
    cand_multi, cand_single = None, None
    limit = max(target_t, upp)
    for d in range(1, L + 1):
        if L % d:
            continue
        t = d * upp
        if t % 128 != 0 or t > limit or d * t * 4 > e_cap_bytes:
            continue
        if L // d >= 2:
            cand_multi = d
        else:
            cand_single = d
    if cand_multi is not None:
        return cand_multi
    if cand_single is not None:
        return cand_single
    # TODO(synk): no 128-aligned tiling of T exists; fall back to one whole-T
    # tile (block dims == full array dims).  Fine for moderate T only.
    return L


def source_module_hn_nsf(f0, upp, noise_key, *,
                         sampling_rate=16000,
                         harmonic_num=0,
                         sine_amp=0.1,
                         add_noise_std=0.003,
                         voiced_threshold=0.0,
                         prev_phase=None,
                         tile_target=2048):
    """Forward pass of SourceModuleHnNSF.

    f0  : (B, L) float32 fundamental frequency (frame rate)
    upp : int upsampling factor
    Returns (sine_merge, None, None), sine_merge of shape (B, L*upp, D) f32.
    """
    f0 = f0.astype(jnp.float32)
    B, L = f0.shape
    D = harmonic_num + 1
    T = L * upp
    R = B * D
    Rp = ((R + 7) // 8) * 8                    # sublane-dense row count
    two_pi = 2.0 * jnp.pi

    # ---- tiny per-frame precompute (all (B, D, L), negligible HBM traffic) ---
    mult = jnp.arange(1, D + 1, dtype=jnp.float32)                  # 1..D
    rad = f0[:, None, :] * mult[None, :, None] * jnp.float32(two_pi / sampling_rate)

    # Exclusive per-frame cumsum of the whole-frame phase advance (upp * rad),
    # plus prev_phase, wrapped to [0, 2pi).  Inside a frame the phase is then
    # fo + (i+1)*rad, reproducing the inclusive per-sample cumsum exactly.
    frame_adv = rad * jnp.float32(upp)
    excl = jnp.concatenate(
        [jnp.zeros_like(frame_adv[..., :1]),
         jnp.cumsum(frame_adv[..., :-1], axis=-1)], axis=-1)
    if prev_phase is None:
        prev_phase = jnp.zeros((B, D), dtype=jnp.float32)
    fo = excl + prev_phase.astype(jnp.float32)[:, :, None]
    fo = fo - jnp.float32(two_pi) * jnp.floor(fo * jnp.float32(1.0 / two_pi))

    uv = (f0 > jnp.float32(voiced_threshold)).astype(jnp.float32)   # (B, L)
    uv_bd = jnp.broadcast_to(uv[:, None, :], (B, D, L))

    def pad_rows(x):                                   # (B, D, L) -> (Rp, L)
        x = x.reshape(R, L)
        if Rp > R:
            x = jnp.concatenate([x, jnp.zeros((Rp - R, L), jnp.float32)], axis=0)
        return x

    # Pack [fo ; rad ; uv] into one LHS so the kernel does a single matmul.
    params = jnp.concatenate([pad_rows(fo), pad_rows(rad), pad_rows(uv_bd)], axis=0)

    # ---- tiling: whole frames per tile, lane-dense TILE_T --------------------
    tile_l = _pick_tile_frames(L, upp, tile_target)
    tile_t = tile_l * upp
    n_tiles = L // tile_l

    params_t = params.reshape(3 * Rp, n_tiles, tile_l).transpose(1, 0, 2)

    # Nearest-upsample expansion matrix (frames -> samples), reused every tile
    # (constant index_map -> resident in VMEM).
    s = jnp.arange(tile_t)
    e_mat = (jnp.arange(tile_l)[:, None] == (s // upp)[None, :]).astype(jnp.float32)

    # Standard-normal noise generated host-side (the stateful on-chip PRNG has
    # no CPU/interpret lowering); streamed in per tile, lane-dense.
    z = jax.random.normal(noise_key, (Rp, T), dtype=jnp.float32)

    kernel = functools.partial(_nsf_kernel, rp=Rp, upp=int(upp),
                               sine_amp=float(sine_amp),
                               noise_std=float(add_noise_std))

    cost = pl.CostEstimate(
        flops=6 * Rp * L * tile_t + 12 * Rp * T,
        transcendentals=2 * Rp * T,                      # sin + tanh only
        bytes_accessed=4 * (2 * Rp * T + 3 * Rp * L + tile_l * tile_t))

    out_rt = pl.pallas_call(
        kernel,
        out_shape=jax.ShapeDtypeStruct((Rp, T), jnp.float32),
        grid=(n_tiles,),
        in_specs=[
            pl.BlockSpec((1, 3 * Rp, tile_l), lambda t: (t, 0, 0)),   # packed params
            pl.BlockSpec((tile_l, tile_t), lambda t: (0, 0)),          # expansion E
            pl.BlockSpec((Rp, tile_t), lambda t: (0, t)),              # noise z
        ],
        out_specs=pl.BlockSpec((Rp, tile_t), lambda t: (0, t)),
        compiler_params=pltpu.CompilerParams(
            dimension_semantics=("parallel",)),
        cost_estimate=cost,
    )(params_t, e_mat, z)

    # (Rp, T) -> drop padded rows -> (B, D, T) -> (B, T, D) (torch layout).
    sine_merge = out_rt[:R].reshape(B, D, T).transpose(0, 2, 1)
    return sine_merge, None, None


def _reference_no_noise(f0, upp, sr, harmonic_num, sine_amp, voiced_threshold):
    """Pure-JAX torch-equivalent forward with the noise term set to zero."""
    B, L = f0.shape
    D = harmonic_num + 1
    mult = jnp.arange(1, D + 1, dtype=jnp.float32)
    rad = f0[:, None, :] * mult[None, :, None] * (2.0 * jnp.pi / sr)    # (B,D,L)
    rad_up = jnp.repeat(rad, upp, axis=-1)                              # (B,D,T)
    phase = jnp.mod(jnp.cumsum(rad_up, axis=-1), 2.0 * jnp.pi)
    sine = jnp.sin(phase) * sine_amp
    uv = (f0 > voiced_threshold).astype(jnp.float32)
    uv_up = jnp.repeat(uv, upp, axis=-1)[:, None, :]                    # (B,1,T)
    return jnp.tanh(sine * uv_up), uv_up


if __name__ == "__main__":
    key = jax.random.PRNGKey(0)
    k_f0, k_noise, k_f0b, k_noise_b = jax.random.split(key, 4)

    # --- test 1: small shapes, deterministic voiced-region check -------------
    B, L, upp = 2, 8, 16
    harmonic_num = 3
    sr = 16000
    f0 = jax.random.uniform(k_f0, (B, L), minval=0.0, maxval=400.0,
                            dtype=jnp.float32)
    f0 = jnp.where(f0 < 100.0, 0.0, f0)        # some unvoiced frames

    sine_merge, _, _ = source_module_hn_nsf(
        f0, upp, k_noise, sampling_rate=sr, harmonic_num=harmonic_num,
        sine_amp=0.1, add_noise_std=0.003, voiced_threshold=0.0)
    sine_merge = jax.block_until_ready(sine_merge)

    assert sine_merge.shape == (B, L * upp, harmonic_num + 1), sine_merge.shape
    assert sine_merge.dtype == jnp.float32
    assert bool(jnp.all(jnp.isfinite(sine_merge)))
    assert bool(jnp.all(jnp.abs(sine_merge) <= 1.0))      # tanh output

    # On voiced samples the noise contribution is bounded by noise_std*|z|,
    # so the kernel must match the no-noise reference closely there.
    ref_bdt, uv_up = _reference_no_noise(f0, upp, sr, harmonic_num, 0.1, 0.0)
    ref_btd = jnp.transpose(ref_bdt, (0, 2, 1))           # (B, T, D)
    mask_btd = jnp.transpose(uv_up, (0, 2, 1))            # (B, T, 1)
    max_err = float(jnp.max(jnp.abs(sine_merge - ref_btd) * mask_btd))
    assert max_err < 0.05, max_err

    # --- test 2: multi-tile grid (T = 2048 -> two 1024-sample parallel tiles) -
    f0b = jax.random.uniform(k_f0b, (1, 128), minval=80.0, maxval=400.0,
                             dtype=jnp.float32)
    out2, _, _ = source_module_hn_nsf(f0b, 16, k_noise_b, sampling_rate=sr,
                                      harmonic_num=7)
    out2 = jax.block_until_ready(out2)
    assert out2.shape == (1, 128 * 16, 8), out2.shape
    assert bool(jnp.all(jnp.isfinite(out2)))
    assert bool(jnp.all(jnp.abs(out2) <= 1.0))

    print("KERNEL_OK")
</pallas_src>

<mosaic_0001>
module attributes {stable_mosaic.version = 11 : i64} {
  func.func @_nsf_kernel(%arg0: i32, %arg1: memref<1x24x8xf32, #tpu.memory_space<vmem>>, %arg2: memref<8x128xf32, #tpu.memory_space<vmem>>, %arg3: memref<8x128xf32, #tpu.memory_space<vmem>>, %arg4: memref<8x128xf32, #tpu.memory_space<vmem>>) attributes {dimension_semantics = [#tpu.dimension_semantics<parallel>], iteration_bounds = array<i64: 1>, scalar_prefetch = 0 : i64, scratch_operands = 0 : i64, tpu.core_type = #tpu.core_type<tc>, window_params = [{transform_indices = @transform_0, window_bounds = array<i64: 1, 24, 8>}, {pipeline_mode = #tpu.pipeline_mode<synchronous>, transform_indices = @transform_1, window_bounds = array<i64: 8, 128>}, {transform_indices = @transform_2, window_bounds = array<i64: 8, 128>}, {transform_indices = @transform_3, window_bounds = array<i64: 8, 128>}]} {
    %c0 = arith.constant 0 : index
    %c0_0 = arith.constant 0 : index
    %c0_1 = arith.constant 0 : index
    %0 = vector.load %arg1[%c0, %c0_0, %c0_1] : memref<1x24x8xf32, #tpu.memory_space<vmem>>, vector<1x24x8xf32>
    %1 = vector.shape_cast %0 : vector<1x24x8xf32> to vector<24x8xf32>
    %c0_2 = arith.constant 0 : index
    %c0_3 = arith.constant 0 : index
    %2 = vector.load %arg2[%c0_2, %c0_3] : memref<8x128xf32, #tpu.memory_space<vmem>>, vector<8x128xf32>
    %cst = arith.constant dense<0.000000e+00> : vector<24x128xf32>
    %3 = tpu.matmul %1, %2, %cst {dimension_numbers = #tpu.dot_dimension_numbers<[1], [0], [0], [1], [0, 0, 1, 1], [], []>} : vector<24x8xf32>, vector<8x128xf32>, vector<24x128xf32> -> vector<24x128xf32>
    %4 = vector.extract_strided_slice %3 {offsets = [0, 0], sizes = [8, 128], strides = [1, 1]} : vector<24x128xf32> to vector<8x128xf32>
    %5 = vector.extract_strided_slice %3 {offsets = [8, 0], sizes = [8, 128], strides = [1, 1]} : vector<24x128xf32> to vector<8x128xf32>
    %6 = vector.extract_strided_slice %3 {offsets = [16, 0], sizes = [8, 128], strides = [1, 1]} : vector<24x128xf32> to vector<8x128xf32>
    %7 = tpu.iota {dimensions = array<i32: 1>} : vector<1x128xi32>
    %c16_i32 = arith.constant 16 : i32
    %c0_i32 = arith.constant 0 : i32
    %8 = arith.cmpi eq, %c16_i32, %c0_i32 : i32
    %c1_i32 = arith.constant 1 : i32
    %9 = arith.select %8, %c1_i32, %c16_i32 : i32
    %10 = vector.broadcast %9 : i32 to vector<1x128xi32>
    %11 = arith.remsi %7, %10 : vector<1x128xi32>
    %c0_i32_4 = arith.constant 0 : i32
    %12 = vector.broadcast %c0_i32_4 : i32 to vector<1x128xi32>
    %13 = arith.cmpi ne, %11, %12 : vector<1x128xi32>
    %c0_i32_5 = arith.constant 0 : i32
    %14 = vector.broadcast %c0_i32_5 : i32 to vector<1x128xi32>
    %15 = arith.cmpi slt, %11, %14 : vector<1x128xi32>
    %c0_i32_6 = arith.constant 0 : i32
    %16 = arith.cmpi slt, %9, %c0_i32_6 : i32
    %17 = vector.broadcast %16 : i1 to vector<1x128xi1>
    %18 = vector.broadcast %17 : vector<1x128xi1> to vector<1x128xi1>
    %19 = arith.xori %15, %18 : vector<1x128xi1>
    %20 = arith.andi %19, %13 : vector<1x128xi1>
    %21 = vector.broadcast %9 : i32 to vector<1x128xi32>
    %22 = arith.addi %11, %21 : vector<1x128xi32>
    %23 = arith.select %20, %22, %11 : vector<1x128xi1>, vector<1x128xi32>
    %c1_i32_7 = arith.constant 1 : i32
    %24 = vector.broadcast %c1_i32_7 : i32 to vector<1x128xi32>
    %25 = arith.addi %23, %24 : vector<1x128xi32>
    %26 = arith.sitofp %25 : vector<1x128xi32> to vector<1x128xf32>
    %27 = vector.broadcast %26 : vector<1x128xf32> to vector<8x128xf32>
    %28 = arith.mulf %5, %27 : vector<8x128xf32>
    %29 = arith.addf %4, %28 : vector<8x128xf32>
    %cst_8 = arith.constant 0.159154937 : f32
    %30 = vector.broadcast %cst_8 : f32 to vector<8x128xf32>
    %31 = arith.mulf %29, %30 : vector<8x128xf32>
    %32 = math.floor %31 : vector<8x128xf32>
    %cst_9 = arith.constant 6.28318548 : f32
    %33 = vector.broadcast %cst_9 : f32 to vector<8x128xf32>
    %34 = arith.mulf %33, %32 : vector<8x128xf32>
    %35 = arith.subf %29, %34 : vector<8x128xf32>
    %36 = math.sin %35 : vector<8x128xf32>
    %cst_10 = arith.constant 1.000000e-01 : f32
    %37 = vector.broadcast %cst_10 : f32 to vector<8x128xf32>
    %38 = arith.mulf %36, %37 : vector<8x128xf32>
    %cst_11 = arith.constant 3.000000e-03 : f32
    %39 = vector.broadcast %cst_11 : f32 to vector<8x128xf32>
    %40 = arith.mulf %6, %39 : vector<8x128xf32>
    %cst_12 = arith.constant 1.000000e+00 : f32
    %41 = vector.broadcast %cst_12 : f32 to vector<8x128xf32>
    %42 = arith.subf %41, %6 : vector<8x128xf32>
    %cst_13 = arith.constant 0.0333333351 : f32
    %43 = vector.broadcast %cst_13 : f32 to vector<8x128xf32>
    %44 = arith.mulf %42, %43 : vector<8x128xf32>
    %45 = arith.addf %40, %44 : vector<8x128xf32>
    %46 = arith.mulf %38, %6 : vector<8x128xf32>
    %c0_14 = arith.constant 0 : index
    %c0_15 = arith.constant 0 : index
    %47 = vector.load %arg3[%c0_14, %c0_15] : memref<8x128xf32, #tpu.memory_space<vmem>>, vector<8x128xf32>
    %48 = arith.mulf %45, %47 : vector<8x128xf32>
    %49 = arith.addf %46, %48 : vector<8x128xf32>
    %50 = math.tanh %49 : vector<8x128xf32>
    %c0_16 = arith.constant 0 : index
    %c0_17 = arith.constant 0 : index
    %51 = vector.load %arg4[%c0_16, %c0_17] : memref<8x128xf32, #tpu.memory_space<vmem>>, vector<8x128xf32>
    tpu.vector_store %arg4[%c0_16, %c0_17], %50 {strides = array<i32>} : memref<8x128xf32, #tpu.memory_space<vmem>>, vector<8x128xf32>,
    return
  }
  func.func @transform_0(%arg0: i32) -> (i32, i32, i32) {
    %c0_i32 = arith.constant 0 : i32
    %c0_i32_0 = arith.constant 0 : i32
    %c0_i32_1 = arith.constant 0 : i32
    return %arg0, %c0_i32, %c0_i32_0 : i32, i32, i32
  }
  func.func @transform_1(%arg0: i32) -> (i32, i32) {
    %c0_i32 = arith.constant 0 : i32
    %c0_i32_0 = arith.constant 0 : i32
    %c0_i32_1 = arith.constant 0 : i32
    return %c0_i32, %c0_i32_0 : i32, i32
  }
  func.func @transform_2(%arg0: i32) -> (i32, i32) {
    %c0_i32 = arith.constant 0 : i32
    %c0_i32_0 = arith.constant 0 : i32
    return %c0_i32, %arg0 : i32, i32
  }
  func.func @transform_3(%arg0: i32) -> (i32, i32) {
    %c0_i32 = arith.constant 0 : i32
    %c0_i32_0 = arith.constant 0 : i32
    return %c0_i32, %arg0 : i32, i32
  }
}

</mosaic_0001>

<bundles_post_ra>
// kernel: tpu_custom_call.1
= control target key start
LH: loop header
LB: loop body
LE: loop exit
PB: predicated region body
PF: predicated region fallthrough
CT: control target
= control target key end

     0   :  { %v327_v1 = vmov 0.0   ;;  %vm19_vm0 = vcmask 64512   ;;  %s409_s0 = inlined_call_operand.vmem [shape: f32[1,24,8], index: 0, kind: input, shape index: {}]   ;;  %s410_s1 = inlined_call_operand.vmem [shape: f32[8,128], index: 1, kind: input, shape index: {}]   ;;  %s411_s2 = inlined_call_operand.vmem [shape: f32[8,128], index: 2, kind: input, shape index: {}]   ;;  %s412_s3 = inlined_call_operand.hbm [shape: f32[8,128], index: 3, kind: output, shape index: {}]  }
   0x1   :  { %v18_v0 = vld [vmem:[%s410_s1] sm:$0xff]  ;;  %282 = vmatprep.subr.mxu1 %v327_v1  ;;  %271 = vmatprep.subr.mxu0 %v327_v1  ;;  %v16_v2 = vld [vmem:[%s409_s0 + $0x8] sm:$0xff] }
   0x2   :  { %v15_v3 = vld [vmem:[%s409_s0] sm:$0xff] }
   0x3   :  { %8 = vsyncpa [#allocation3], 0  ;;  %283 = vmatpush3.msra.mxu1 %v18_v0  ;;  %vm328_vm1 = vmmov 0   ;;  %272 = vmatpush3.msra.mxu0 %v18_v0  ;;  %v17_v4 = vld [vmem:[%s409_s0 + $0x10] sm:$0xff]  ;;  %v109_v5 = vlaneseq  ;;  %v329_v32 = vmov 683565275  }
   0x4   :  { %276 = vmatprep.mubr.msk.f32.mxu1 %vm328_vm1, %v327_v1  ;;  %273 = vmatprep.mubr.msk.f32.mxu0 %vm328_vm1, %v327_v1  ;;  %v330_v34 = vmov 2475754826   ;;  %v331_v37 = vmov 2131351028   ;;  %v332_v40 = vmov 2102212464  }
   0x5   :  { %277 = vmatmul.mubr.msk.f32.vlgmr.msra.gmra.mrb[0].mxu1 %vm19_vm0, %v16_v2  ;;  %274 = vmatmul.mubr.msk.f32.vlgmr.msra.gmra.mrb[0].mxu0 %vm19_vm0, %v15_v3  ;;  %v110_v6 = vand.u32 127, %v109_v5  ;;  %v333_v43 = vmov 920167782   ;;  %v334_v46 = vmov 1326507024   ;;  %s335_s20 = smov [#allocation2]  }
   0x6   :  { %279 = vmatprep.mubr.msk.f32.mxu1 %vm328_vm1, %v327_v1  ;;  %s252_s21 = sshll.u32 %s335_s20, 4  ;;  %s253_s21 = int_to_ptr.vmem [resolvable:$true] %s252_s21 }
   0x7   :  { %v115_v7 = vand.u32 15, %v110_v6  ;;  %s303_s22 = scalar_lea.vmem %s253_s21, 128  ;;  %p308_p1 = scmp.lt.s32.totalorder %s253_s21, %s253_s21 }
   0x8   :  { %p304_p0 = scmp.ne.s32.totalorder %s253_s21, %s303_s22  ;;  %p309_p2 = scmp.lt.s32.totalorder %s303_s22, %s303_s22 }
   0x9   :  { %280 = vmatmul.mubr.msk.f32.gmra.mrb[2].mxu1 %vm19_vm0, %v17_v4  ;;  %v123_v8 = vadd.s32 1, %v115_v7 }
   0xa   :  { %p310_p3 = por %p309_p2, %p308_p1 }
   0xb   :  { %v124_v9 = vcvt.s32.f32 %v123_v8 }
   0xc   :  { %p311_p4 = pnand %p310_p3, %p304_p0 }
  0xd8   :  { %v100_v10 = vpop.f32.mrb[0].mxu1  ;;  %v95_v11 = vpop.f32.mrb[0].mxu0 }
  0xd9   :  { %v125_v12 = vmul.f32 %v124_v9, %v100_v10  ;;  %v278_v13 = vpop.f32.mrb[1].mxu1  ;;  %v275_v14 = vpop.f32.mrb[1].mxu0 }
  0xdb   :  { %v126_v15 = vadd.f32 %v125_v12, %v95_v11 }
  0xdc   :  { %v368_v16 = vpop.f32.mrb[2].mxu1 }
  0xdd   :  { %v127_v17 = vmul.f32 0.15915494, %v126_v15  ;;  %v281_v18 = vpop.f32.mrb[3].mxu1 }
  0xdf   :  { %v128_v19 = vfloor.f32 %v127_v17 }
  0xe1   :  { %v129_v20 = vmul.f32 6.2831855, %v128_v19 }
  0xe3   :  { %v370_v21 = vsub.f32 %v126_v15, %v129_v20 }
  0xe5   :  { %v134_v22 = vand.u32 2139095040, %v370_v21  ;;  %v131_v26 = vand.u32 2147483647, %v370_v21  ;;  %vm133_vm9 = vcmp.lt.s32.totalorder %v370_v21, 0  ;;  %vm223_vm14 = vweird.f32 %v370_v21 }
  0xe7   :  { %v135_v23 = vshrl.u32 %v134_v22, 23  ;;  %v138_v29 = vand.u32 8388607, %v131_v26  ;;  %vm132_vm10 = vcmp.le.f32.partialorder %v131_v26, 0.7853982 }
  0xe9   :  { %v263_v24 = vadd.s32 4294967169, %v135_v23  ;;  %v139_v48 = vor.u32 8388608, %v138_v29 }
  0xeb   :  { %v141_v25 = vadd.s32 1, %v263_v24  ;;  %v179_v62 = vshll.u32 %v139_v48, 8  ;;  %v236_v48 = vmul.f32 0.003, %v368_v16 }
  0xed   :  { %vm142_vm2 = vcmp.gt.s32.totalorder %v141_v25, 0 }
  0xee   :  { %v143_v27 = vsel %vm142_vm2, %v141_v25, 0 }
  0xef   :  { %v145_v28 = vand.u32 31, %v143_v27  ;;  %v144_v31 = vshrl.u32 %v143_v27, 5 }
  0xf1   :  { %v146_v30 = vsub.s32 32, %v145_v28  ;;  %v148_v33 = vshll.u32 %v329_v32, %v145_v28  ;;  %v151_v35 = vshll.u32 %v330_v34, %v145_v28  ;;  %v154_v39 = vshll.u32 %v331_v37, %v145_v28 }
  0xf2   :  { %v157_v42 = vshll.u32 %v332_v40, %v145_v28  ;;  %v160_v45 = vshll.u32 %v333_v43, %v145_v28  ;;  %vm163_vm3 = vcmp.lt.s32.totalorder %v144_v31, 1  ;;  %vm166_vm4 = vcmp.lt.s32.totalorder %v144_v31, 4 }
  0xf3   :  { %v149_v36 = vshrl.u32 %v330_v34, %v146_v30  ;;  %v152_v38 = vshrl.u32 %v331_v37, %v146_v30  ;;  %v155_v41 = vshrl.u32 %v332_v40, %v146_v30  ;;  %v158_v44 = vshrl.u32 %v333_v43, %v146_v30 }
  0xf4   :  { %v161_v47 = vshrl.u32 %v334_v46, %v146_v30  ;;  %v147_v57 = vshrl.u32 %v329_v32, %v146_v30  ;;  %vm165_vm5 = vcmp.lt.s32.totalorder %v144_v31, 3  ;;  %vm164_vm6 = vcmp.lt.s32.totalorder %v144_v31, 2 }
  0xf5   :  { %v150_v49 = vor.u32 %v149_v36, %v148_v33  ;;  %v153_v50 = vor.u32 %v152_v38, %v151_v35  ;;  %v156_v51 = vor.u32 %v155_v41, %v154_v39  ;;  %v159_v52 = vor.u32 %v158_v44, %v157_v42 }
  0xf6   :  { %v162_v53 = vor.u32 %v161_v47, %v160_v45  ;;  %v237_v43 = vsub.f32 1.0, %v368_v16 }
  0xf7   :  { %v168_v54 = vsel %vm166_vm4, %v156_v51, 2102212464  ;;  %v171_v55 = vsel %vm163_vm3, %v150_v49, %v153_v50  ;;  %v175_v56 = vsel %vm163_vm3, %v153_v50, %v156_v51  ;;  %v172_v58 = vsel %vm166_vm4, %v159_v52, 920167782 }
  0xf8   :  { %v176_v59 = vsel %vm166_vm4, %v162_v53, 1326507024  ;;  %v173_v60 = vsel %vm165_vm5, %v156_v51, %v172_v58  ;;  %v167_v63 = vsel %vm163_vm3, %v147_v57, %v150_v49  ;;  %v169_v0 = vsel %vm165_vm5, %v153_v50, %v168_v54 }
  0xf9   :  { %v177_v61 = vsel %vm165_vm5, %v159_v52, %v176_v59  ;;  %v174_v1 = vsel %vm164_vm6, %v171_v55, %v173_v60  ;;  %v170_v7 = vsel %vm164_vm6, %v167_v63, %v169_v0  ;;  %v238_v49 = vmul.f32 0.033333335, %v237_v43  ;;  %v241_v55 = vld [vmem:[%s411_s2] sm:$0xff] }
  0xfa   :  { %v178_v2 = vsel %vm164_vm6, %v175_v56, %v177_v61  ;;  %v379_v5 = vmul.u32.u64.low %v179_v62, %v174_v1  ;;  %v380_v6 = vmul.u32.u64.high %v179_v62, %v174_v1, %v379_v5  ;;  %v186_v9 = vmul.u32 %v179_v62, %v170_v7 }
  0xfb   :  { %v376_v3 = vmul.u32.u64.low %v179_v62, %v178_v2  ;;  %v377_v4 = vmul.u32.u64.high %v179_v62, %v178_v2, %v376_v3  ;;  %v239_v53 = vadd.f32 %v238_v49, %v236_v48 }
  0xfc   :  { %v189_v8 = vadd.s32 1, %v380_v6 }
  0xfd   :  { %vm188_vm7 = vc.u32 %v377_v4, %v379_v5  ;;  %v187_v23 = vadd.s32 %v379_v5, %v377_v4  ;;  %v242_v58 = vmul.f32 %v241_v55, %v239_v53 }
  0xfe   :  { %v190_v10 = vsel %vm188_vm7, %v189_v8, %v380_v6 }
  0xff   :  { %v191_v11 = vadd.s32 %v190_v10, %v186_v9 }
 0x101   :  { %v192_v12 = vadd.s32 536870912, %v191_v11 }
 0x103   :  { %v193_v13 = vshrl.u32 %v192_v12, 30 }
 0x105   :  { %v194_v14 = vshll.u32 %v193_v13, 30  ;;  %v217_v36 = vsub.s32 4, %v193_v13 }
 0x107   :  { %v195_v15 = vsub.s32 %v191_v11, %v194_v14  ;;  %v218_v39 = vsel %vm133_vm9, %v217_v36, %v193_v13 }
 0x108   :  { %v220_v41 = vsel %vm132_vm10, 0, %v218_v39 }
 0x109   :  { %v197_v17 = vsub.s32 0, %v195_v15  ;;  %v224_v42 = vadd.s32 3, %v220_v41 }
 0x10b   :  { %v264_v18 = vmin.u32 %v197_v17, %v195_v15  ;;  %v225_v44 = vand.u32 3, %v224_v42 }
 0x10d   :  { %v199_v19 = vclz %v264_v18  ;;  %vm230_vm11 = vcmp.eq.s32.totalorder %v225_v44, 2  ;;  %vm227_vm12 = vcmp.eq.s32.totalorder %v225_v44, 0  ;;  %vm226_vm13 = vcmp.lt.s32.totalorder %v225_v44, 2 }
 0x10f   :  { %v265_v20 = vadd.s32 4294967294, %v199_v19 }
 0x111   :  { %vm266_vm8 = vcmp.lt.s32.totalorder %v265_v20, 0 }
 0x112   :  { %v202_v22 = vsel %vm266_vm8, 0, %v265_v20 }
 0x113   :  { %v203_v24 = vsub.s32 32, %v202_v22  ;;  %v207_v25 = vsub.s32 4294967266, %v202_v22  ;;  %v204_v27 = vshll.u32 %v195_v15, %v202_v22 }
 0x115   :  { %v205_v28 = vshrl.u32 %v187_v23, %v203_v24  ;;  %v208_v29 = vadd.s32 127, %v207_v25 }
 0x117   :  { %v206_v30 = vor.u32 %v205_v28, %v204_v27  ;;  %v209_v31 = vshll.u32 %v208_v29, 23 }
 0x119   :  { %v210_v32 = vor.u32 4788187, %v209_v31  ;;  %v213_v34 = vcvt.s32.f32 %v206_v30 }
 0x11b   :  { %v211_v33 = vand.u32 2147483647, %v210_v32 }
 0x11d   :  { %v214_v35 = vmul.f32 %v213_v34, %v211_v33 }
 0x11f   :  { %v215_v37 = vxor.u32 2147483648, %v214_v35 }
 0x121   :  { %v216_v38 = vsel %vm133_vm9, %v215_v37, %v214_v35 }
 0x122   :  { %v219_v40 = vsel %vm132_vm10, %v370_v21, %v216_v38 }
 0x123   :  { %297 = vcosq.f32 %v219_v40 }
 0x124   :  { %299 = vsinq.f32 %v219_v40 }
 0x12d   :  { %v298_v45 = vpop.eup %297 }
 0x12e   :  { %v300_v46 = vpop.eup %299  ;;  %v231_v47 = vxor.u32 2147483648, %v298_v45 }
 0x12f   :  { %v228_v50 = vxor.u32 2147483648, %v300_v46 }
 0x130   :  { %v232_v26 = vsel %vm230_vm11, %v231_v47, %v300_v46 }
 0x131   :  { %v229_v51 = vsel %vm227_vm12, %v298_v45, %v228_v50 }
 0x132   :  { %v233_v52 = vsel %vm226_vm13, %v229_v51, %v232_v26 }
 0x133   :  { %v234_v54 = vsel %vm223_vm14, nan, %v233_v52 }
 0x134   :  { %v235_v56 = vmul.f32 0.1, %v234_v54 }
 0x136   :  { %v240_v57 = vmul.f32 %v235_v56, %v368_v16 }
 0x138   :  { %v243_v59 = vadd.f32 %v242_v58, %v240_v57 }
 0x13a   :  { %301 = vtanh.f32 %v243_v59 }
 0x144   :  { %v302_v60 = vpop.eup %301 }
 0x145   :  { %245 = vst [vmem:[#allocation2] sm:$0xff] %v302_v60 }
 0x146   :  { %314 = shalt.err (!%p311_p4)
}
 0x147   :  { %s315_s24 = scalar_lea.hbm %s412_s3, 128 }
 0x148   :  { %p316_p5 = scmp.ne.s32.totalorder %s412_s3, %s315_s24  ;;  %p319_p6 = scmp.lt.u32.totalorder %s315_s24, %s412_s3 }
 0x14a   :  { %p321_p7 = pnand %p319_p6, %p316_p5 }
 0x14c   :  { %324 = shalt.err (!%p321_p7)
}
 0x14d   :  { %255 = dma.vmem_to_hbm [thread:$0]  %s253_s21, 128, %s412_s3, [#allocation3]  }
 0x14e   :  { %325 = dma.done.wait [#allocation3], 128  }
 0x14f   :  { %326 = vsyncadd [#allocation3], 4294967168 }
 0x150   :  { %259 = vsyncpa [#allocation3], 1 }

</bundles_post_ra>
